<compile_context>
chip_gen: v7x
topology: tpu7x:2x2x1
jax: 0.10.0
libtpu: 0.0.40
codegen_flags: <defaults>
</compile_context>

<pallas_src>
import math

import jax
import jax.numpy as jnp
from jax.experimental import pallas as pl
from jax.experimental.pallas import tpu as pltpu

EPS = 1e-5  # both the custom Layernorm and nn.LayerNorm default eps


def _ln(x, g, b):
    """Layernorm over the last axis (biased variance) — matches the torch code."""
    mu = jnp.mean(x, axis=-1, keepdims=True)
    var = jnp.mean((x - mu) ** 2, axis=-1, keepdims=True)
    return (x - mu) * jax.lax.rsqrt(var + EPS) * g + b


def _ctx_pred_kernel(bert_ref, hist_ref, emo_ref, mrow_ref, mcol_ref,
                     wqkv_ref, wfc_ref, wl_ref, bqkv_ref, p_ref, o_ref):
    # Static shapes:
    #   bert_ref / hist_ref / o_ref : (B*S, H)   flattened batch*seq
    #   emo_ref                     : (B, H)
    #   mrow_ref                    : (B, S, 1)  bert_mask, sublane layout (query mask)
    #   mcol_ref                    : (B, S)     bert_mask, lane layout    (key mask)
    #   wqkv_ref                    : (H, 3H)    fused q|k|v projection
    #   wfc_ref, wl_ref             : (H, H)
    #   bqkv_ref                    : (1, 3H)    fused q|k|v bias
    #   p_ref                       : (8, H) -> bfc, blin, mha_g, mha_b,
    #                                           ln1_g, ln1_b, ln2_g, ln2_b
    B, S = mcol_ref.shape
    H = bert_ref.shape[1]

    bert = bert_ref[...]
    hist = hist_ref[...]
    emo = emo_ref[...]
    mrow = mrow_ref[...]          # (B, S, 1)
    mcol = mcol_ref[...]          # (B, S)

    # hc = bert + emotion_context (broadcast over seq) + history_context
    hc_parts = []
    for b in range(B):
        sl = slice(b * S, (b + 1) * S)
        hc_parts.append(bert[sl, :] + hist[sl, :] + emo[b:b + 1, :])
    hc = jnp.concatenate(hc_parts, axis=0)            # (B*S, H)

    # --- single-head self attention (MultiHeadAttention with n_head=1) ---
    # fused q/k/v projection: one (B*S, H) @ (H, 3H) MXU pass
    qkv = jnp.dot(hc, wqkv_ref[...],
                  preferred_element_type=jnp.float32) + bqkv_ref[...]

    scale = 1.0 / math.sqrt(H)                        # temperature = sqrt(d_k)
    ctx_parts = []
    for b in range(B):
        sl = slice(b * S, (b + 1) * S)
        q = qkv[sl, 0 * H:1 * H]
        k = qkv[sl, 1 * H:2 * H]
        v = qkv[sl, 2 * H:3 * H]
        # mask built in-kernel: (S,1)*(1,S) outer product, no O(S^2) HBM traffic
        amask = mrow[b] * mcol[b:b + 1, :]            # (S, S)
        scores = jax.lax.dot_general(
            q, k, (((1,), (1,)), ((), ())),
            preferred_element_type=jnp.float32) * scale
        scores = jnp.where(amask > 0, scores, -1e9)   # masked positions -> -inf-like
        scores = scores - jnp.max(scores, axis=-1, keepdims=True)
        p = jnp.exp(scores)
        # softmax divide on the (otherwise idle) EUP slot
        attn = p * pl.reciprocal(jnp.sum(p, axis=-1, keepdims=True), approx=True)
        # TODO(synk): attention / fc / predictor dropout omitted (eval/inference mode).
        ctx_parts.append(jnp.dot(attn, v, preferred_element_type=jnp.float32))
    ctx = jnp.concatenate(ctx_parts, axis=0)          # (B*S, H)

    bfc, blin = p_ref[0], p_ref[1]
    mha_g, mha_b = p_ref[2], p_ref[3]
    ln1_g, ln1_b = p_ref[4], p_ref[5]
    ln2_g, ln2_b = p_ref[6], p_ref[7]

    out = jnp.dot(ctx, wfc_ref[...], preferred_element_type=jnp.float32) + bfc
    out = _ln(out + hc, mha_g, mha_b)                 # MHA-internal residual + LayerNorm

    # --- outer residual / layernorm / FFN ---
    hc = _ln(hc + out, ln1_g, ln1_b)                                   # layernorm1
    lin = jnp.maximum(
        jnp.dot(hc, wl_ref[...], preferred_element_type=jnp.float32) + blin, 0.0)
    o_ref[...] = _ln(hc + lin, ln2_g, ln2_b)                           # layernorm2


def context_predictor_forward(bert, history_context, emotion_context, bert_mask, W, P):
    """bert/history_context: (B,S,H); emotion_context: (B,1,H); bert_mask: (B,S).

    W: (5,H,H) stacked q,k,v,fc,linear weights (stored (in,out)).
    P: (11,H)  stacked bq,bk,bv,bfc,blin, mha_ln(g,b), ln1(g,b), ln2(g,b).
    """
    B, S, H = bert.shape

    # one-time parameter restacking: fuse q/k/v weight + bias along the output dim
    w_qkv = jnp.concatenate([W[0], W[1], W[2]], axis=1)       # (H, 3H)
    w_fc, w_lin = W[3], W[4]
    b_qkv = jnp.concatenate([P[0], P[1], P[2]])[None, :]      # (1, 3H)
    p_rest = P[3:]                                            # (8, H)

    # layout plumbing (not compute hoisting): flatten activations to (B*S, H)
    bert2 = bert.reshape(B * S, H)
    hist2 = history_context.reshape(B * S, H)
    emo2 = emotion_context.reshape(B, H)
    m = bert_mask.astype(jnp.float32)
    m_row = m[:, :, None]                                     # (B,S,1) sublane layout
    m_col = m                                                 # (B,S)   lane layout

    def full(shape):
        return pl.BlockSpec(shape, lambda i, _s=shape: (0,) * len(_s))

    out = pl.pallas_call(
        _ctx_pred_kernel,
        out_shape=jax.ShapeDtypeStruct((B * S, H), jnp.float32),
        grid=(1,),                              # single grid step: whole batch at once
        in_specs=[
            full((B * S, H)),                   # bert
            full((B * S, H)),                   # history_context
            full((B, H)),                       # emotion_context
            full((B, S, 1)),                    # bert_mask (row layout)
            full((B, S)),                       # bert_mask (col layout)
            full((H, 3 * H)),                   # fused q|k|v weight
            full((H, H)),                       # fc weight
            full((H, H)),                       # linear weight
            full((1, 3 * H)),                   # fused q|k|v bias
            full((8, H)),                       # remaining biases / LN params
        ],
        out_specs=full((B * S, H)),
        compiler_params=pltpu.CompilerParams(dimension_semantics=("arbitrary",)),
    )(bert2, hist2, emo2, m_row, m_col, w_qkv, w_fc, w_lin, b_qkv, p_rest)
    return out.reshape(B, S, H)


def _reference(bert, hist, emo, bert_mask, W, P):
    """Pure-JAX mirror of the PyTorch forward, for verification."""
    def ln(x, g, b):
        mu = jnp.mean(x, -1, keepdims=True)
        var = jnp.mean((x - mu) ** 2, -1, keepdims=True)
        return (x - mu) * jax.lax.rsqrt(var + EPS) * g + b

    x = bert + emo
    hc = x + hist
    m = bert_mask.astype(jnp.float32)
    amask = m[:, :, None] * m[:, None, :]
    wq, wk, wv, wfc, wl = W
    q = hc @ wq + P[0]
    k = hc @ wk + P[1]
    v = hc @ wv + P[2]
    H = bert.shape[-1]
    scores = jnp.einsum("bqh,bkh->bqk", q, k) / math.sqrt(H)
    scores = jnp.where(amask > 0, scores, -1e9)
    attn = jax.nn.softmax(scores, axis=-1)
    out = jnp.einsum("bqk,bkh->bqh", attn, v) @ wfc + P[3]
    out = ln(out + hc, P[5], P[6])
    hc = ln(hc + out, P[7], P[8])
    lin = jnp.maximum(hc @ wl + P[4], 0.0)
    return ln(hc + lin, P[9], P[10])


if __name__ == "__main__":
    B, S, H = 2, 8, 32   # encoder_hidden = 32

    key = jax.random.PRNGKey(0)
    ks = jax.random.split(key, 6)

    bert = jax.random.normal(ks[0], (B, S, H), jnp.float32)
    history_context = jax.random.normal(ks[1], (B, S, H), jnp.float32)
    emotion_context = jax.random.normal(ks[2], (B, 1, H), jnp.float32)
    bert_mask = jnp.array(
        [[1, 1, 1, 1, 1, 1, 1, 1],
         [1, 1, 1, 1, 1, 0, 0, 0]], jnp.float32)

    # deterministic synthetic parameters
    W = 0.1 * jax.random.normal(ks[3], (5, H, H), jnp.float32)       # q,k,v,fc,linear
    biases = 0.1 * jax.random.normal(ks[4], (5, H), jnp.float32)     # their biases
    ln_params = jnp.concatenate(
        [jnp.ones((1, H)), jnp.zeros((1, H)),    # MHA-internal LayerNorm
         jnp.ones((1, H)), jnp.zeros((1, H)),    # layernorm1
         jnp.ones((1, H)), jnp.zeros((1, H))],   # layernorm2
        axis=0).astype(jnp.float32)
    P = jnp.concatenate([biases, ln_params], axis=0)                 # (11, H)

    out = context_predictor_forward(bert, history_context, emotion_context,
                                    bert_mask, W, P)
    jax.block_until_ready(out)

    ref = _reference(bert, history_context, emotion_context, bert_mask, W, P)
    assert out.shape == (B, S, H)
    # tolerance loosened vs. exact-divide version: softmax uses the approx EUP reciprocal
    assert jnp.allclose(out, ref, atol=5e-3, rtol=5e-3), "mismatch vs pure-JAX reference"

    print("KERNEL_OK")
</pallas_src>

<mosaic_0001>
module attributes {stable_mosaic.version = 11 : i64} {
  func.func @_ctx_pred_kernel(%arg0: i32, %arg1: memref<16x32xf32, #tpu.memory_space<vmem>>, %arg2: memref<16x32xf32, #tpu.memory_space<vmem>>, %arg3: memref<2x32xf32, #tpu.memory_space<vmem>>, %arg4: memref<2x8x1xf32, #tpu.memory_space<vmem>>, %arg5: memref<2x8xf32, #tpu.memory_space<vmem>>, %arg6: memref<32x96xf32, #tpu.memory_space<vmem>>, %arg7: memref<32x32xf32, #tpu.memory_space<vmem>>, %arg8: memref<32x32xf32, #tpu.memory_space<vmem>>, %arg9: memref<1x96xf32, #tpu.memory_space<vmem>>, %arg10: memref<8x32xf32, #tpu.memory_space<vmem>>, %arg11: memref<16x32xf32, #tpu.memory_space<vmem>>) attributes {dimension_semantics = [#tpu.dimension_semantics<arbitrary>], iteration_bounds = array<i64: 1>, scalar_prefetch = 0 : i64, scratch_operands = 0 : i64, tpu.core_type = #tpu.core_type<tc>, window_params = [{pipeline_mode = #tpu.pipeline_mode<synchronous>, transform_indices = @transform_0, window_bounds = array<i64: 16, 32>}, {pipeline_mode = #tpu.pipeline_mode<synchronous>, transform_indices = @transform_1, window_bounds = array<i64: 16, 32>}, {pipeline_mode = #tpu.pipeline_mode<synchronous>, transform_indices = @transform_2, window_bounds = array<i64: 2, 32>}, {pipeline_mode = #tpu.pipeline_mode<synchronous>, transform_indices = @transform_3, window_bounds = array<i64: 2, 8, 1>}, {pipeline_mode = #tpu.pipeline_mode<synchronous>, transform_indices = @transform_4, window_bounds = array<i64: 2, 8>}, {pipeline_mode = #tpu.pipeline_mode<synchronous>, transform_indices = @transform_5, window_bounds = array<i64: 32, 96>}, {pipeline_mode = #tpu.pipeline_mode<synchronous>, transform_indices = @transform_6, window_bounds = array<i64: 32, 32>}, {pipeline_mode = #tpu.pipeline_mode<synchronous>, transform_indices = @transform_7, window_bounds = array<i64: 32, 32>}, {pipeline_mode = #tpu.pipeline_mode<synchronous>, transform_indices = @transform_8, window_bounds = array<i64: 1, 96>}, {pipeline_mode = #tpu.pipeline_mode<synchronous>, transform_indices = @transform_9, window_bounds = array<i64: 8, 32>}, {pipeline_mode = #tpu.pipeline_mode<synchronous>, transform_indices = @transform_10, window_bounds = array<i64: 16, 32>}]} {
    %c0 = arith.constant 0 : index
    %c0_0 = arith.constant 0 : index
    %0 = vector.load %arg1[%c0, %c0_0] : memref<16x32xf32, #tpu.memory_space<vmem>>, vector<16x32xf32>
    %c0_1 = arith.constant 0 : index
    %c0_2 = arith.constant 0 : index
    %1 = vector.load %arg2[%c0_1, %c0_2] : memref<16x32xf32, #tpu.memory_space<vmem>>, vector<16x32xf32>
    %c0_3 = arith.constant 0 : index
    %c0_4 = arith.constant 0 : index
    %2 = vector.load %arg3[%c0_3, %c0_4] : memref<2x32xf32, #tpu.memory_space<vmem>>, vector<2x32xf32>
    %c0_5 = arith.constant 0 : index
    %c0_6 = arith.constant 0 : index
    %c0_7 = arith.constant 0 : index
    %3 = vector.load %arg4[%c0_5, %c0_6, %c0_7] : memref<2x8x1xf32, #tpu.memory_space<vmem>>, vector<2x8x1xf32>
    %c0_8 = arith.constant 0 : index
    %c0_9 = arith.constant 0 : index
    %4 = vector.load %arg5[%c0_8, %c0_9] : memref<2x8xf32, #tpu.memory_space<vmem>>, vector<2x8xf32>
    %5 = vector.extract_strided_slice %0 {offsets = [0, 0], sizes = [8, 32], strides = [1, 1]} : vector<16x32xf32> to vector<8x32xf32>
    %6 = vector.extract_strided_slice %1 {offsets = [0, 0], sizes = [8, 32], strides = [1, 1]} : vector<16x32xf32> to vector<8x32xf32>
    %7 = arith.addf %5, %6 : vector<8x32xf32>
    %8 = vector.extract_strided_slice %2 {offsets = [0, 0], sizes = [1, 32], strides = [1, 1]} : vector<2x32xf32> to vector<1x32xf32>
    %9 = vector.broadcast %8 : vector<1x32xf32> to vector<8x32xf32>
    %10 = arith.addf %7, %9 : vector<8x32xf32>
    %11 = vector.extract_strided_slice %0 {offsets = [8, 0], sizes = [8, 32], strides = [1, 1]} : vector<16x32xf32> to vector<8x32xf32>
    %12 = vector.extract_strided_slice %1 {offsets = [8, 0], sizes = [8, 32], strides = [1, 1]} : vector<16x32xf32> to vector<8x32xf32>
    %13 = arith.addf %11, %12 : vector<8x32xf32>
    %14 = vector.extract_strided_slice %2 {offsets = [1, 0], sizes = [1, 32], strides = [1, 1]} : vector<2x32xf32> to vector<1x32xf32>
    %15 = vector.broadcast %14 : vector<1x32xf32> to vector<8x32xf32>
    %16 = arith.addf %13, %15 : vector<8x32xf32>
    %17 = tpu.concatenate %10, %16 in 0 : vector<8x32xf32>, vector<8x32xf32> -> vector<16x32xf32>
    %c0_10 = arith.constant 0 : index
    %c0_11 = arith.constant 0 : index
    %18 = vector.load %arg6[%c0_10, %c0_11] : memref<32x96xf32, #tpu.memory_space<vmem>>, vector<32x96xf32>
    %cst = arith.constant dense<0.000000e+00> : vector<16x96xf32>
    %19 = tpu.matmul %17, %18, %cst {dimension_numbers = #tpu.dot_dimension_numbers<[1], [0], [0], [1], [0, 0, 1, 1], [], []>} : vector<16x32xf32>, vector<32x96xf32>, vector<16x96xf32> -> vector<16x96xf32>
    %c0_12 = arith.constant 0 : index
    %c0_13 = arith.constant 0 : index
    %20 = vector.load %arg9[%c0_12, %c0_13] : memref<1x96xf32, #tpu.memory_space<vmem>>, vector<1x96xf32>
    %21 = vector.broadcast %20 : vector<1x96xf32> to vector<16x96xf32>
    %22 = arith.addf %19, %21 : vector<16x96xf32>
    %23 = vector.extract_strided_slice %22 {offsets = [0, 0], sizes = [8, 32], strides = [1, 1]} : vector<16x96xf32> to vector<8x32xf32>
    %24 = vector.extract_strided_slice %22 {offsets = [0, 32], sizes = [8, 32], strides = [1, 1]} : vector<16x96xf32> to vector<8x32xf32>
    %25 = vector.extract_strided_slice %22 {offsets = [0, 64], sizes = [8, 32], strides = [1, 1]} : vector<16x96xf32> to vector<8x32xf32>
    %26 = vector.extract_strided_slice %3 {offsets = [0, 0, 0], sizes = [1, 8, 1], strides = [1, 1, 1]} : vector<2x8x1xf32> to vector<1x8x1xf32>
    %27 = vector.shape_cast %26 : vector<1x8x1xf32> to vector<8x1xf32>
    %28 = vector.extract_strided_slice %4 {offsets = [0, 0], sizes = [1, 8], strides = [1, 1]} : vector<2x8xf32> to vector<1x8xf32>
    %29 = vector.broadcast %27 : vector<8x1xf32> to vector<8x8xf32>
    %30 = vector.broadcast %28 : vector<1x8xf32> to vector<8x8xf32>
    %31 = arith.mulf %29, %30 : vector<8x8xf32>
    %cst_14 = arith.constant dense<0.000000e+00> : vector<8x8xf32>
    %32 = tpu.matmul %23, %24, %cst_14 {dimension_numbers = #tpu.dot_dimension_numbers<[1], [1], [0], [0], [0, 0, 1, 0], [], []>} : vector<8x32xf32>, vector<8x32xf32>, vector<8x8xf32> -> vector<8x8xf32>
    %cst_15 = arith.constant 0.176776692 : f32
    %33 = vector.broadcast %cst_15 : f32 to vector<8x8xf32>
    %34 = arith.mulf %32, %33 : vector<8x8xf32>
    %cst_16 = arith.constant 0.000000e+00 : f32
    %35 = vector.broadcast %cst_16 : f32 to vector<8x8xf32>
    %36 = arith.cmpf ogt, %31, %35 : vector<8x8xf32>
    %cst_17 = arith.constant -1.000000e+09 : f32
    %37 = vector.broadcast %cst_17 : f32 to vector<8x8xf32>
    %38 = arith.select %36, %34, %37 : vector<8x8xi1>, vector<8x8xf32>
    %cst_18 = arith.constant dense<0xFF800000> : vector<8xf32>
    %39 = vector.multi_reduction <maximumf>, %38, %cst_18 [1] : vector<8x8xf32> to vector<8xf32>
    %40 = vector.shape_cast %39 : vector<8xf32> to vector<8x1xf32>
    %41 = vector.broadcast %40 : vector<8x1xf32> to vector<8x8xf32>
    %42 = arith.subf %38, %41 : vector<8x8xf32>
    %43 = math.exp %42 : vector<8x8xf32>
    %cst_19 = arith.constant dense<0.000000e+00> : vector<8xf32>
    %44 = vector.multi_reduction <add>, %43, %cst_19 [1] : vector<8x8xf32> to vector<8xf32>
    %45 = vector.shape_cast %44 : vector<8xf32> to vector<8x1xf32>
    %46 = tpu.reciprocal %45 {approx = true} : vector<8x1xf32> -> vector<8x1xf32>
    %47 = vector.broadcast %46 : vector<8x1xf32> to vector<8x8xf32>
    %48 = arith.mulf %43, %47 : vector<8x8xf32>
    %cst_20 = arith.constant dense<0.000000e+00> : vector<8x32xf32>
    %49 = tpu.matmul %48, %25, %cst_20 {dimension_numbers = #tpu.dot_dimension_numbers<[1], [0], [0], [1], [0, 0, 1, 1], [], []>} : vector<8x8xf32>, vector<8x32xf32>, vector<8x32xf32> -> vector<8x32xf32>
    %50 = vector.extract_strided_slice %22 {offsets = [8, 0], sizes = [8, 32], strides = [1, 1]} : vector<16x96xf32> to vector<8x32xf32>
    %51 = vector.extract_strided_slice %22 {offsets = [8, 32], sizes = [8, 32], strides = [1, 1]} : vector<16x96xf32> to vector<8x32xf32>
    %52 = vector.extract_strided_slice %22 {offsets = [8, 64], sizes = [8, 32], strides = [1, 1]} : vector<16x96xf32> to vector<8x32xf32>
    %53 = vector.extract_strided_slice %3 {offsets = [1, 0, 0], sizes = [1, 8, 1], strides = [1, 1, 1]} : vector<2x8x1xf32> to vector<1x8x1xf32>
    %54 = vector.shape_cast %53 : vector<1x8x1xf32> to vector<8x1xf32>
    %55 = vector.extract_strided_slice %4 {offsets = [1, 0], sizes = [1, 8], strides = [1, 1]} : vector<2x8xf32> to vector<1x8xf32>
    %56 = vector.broadcast %54 : vector<8x1xf32> to vector<8x8xf32>
    %57 = vector.broadcast %55 : vector<1x8xf32> to vector<8x8xf32>
    %58 = arith.mulf %56, %57 : vector<8x8xf32>
    %cst_21 = arith.constant dense<0.000000e+00> : vector<8x8xf32>
    %59 = tpu.matmul %50, %51, %cst_21 {dimension_numbers = #tpu.dot_dimension_numbers<[1], [1], [0], [0], [0, 0, 1, 0], [], []>} : vector<8x32xf32>, vector<8x32xf32>, vector<8x8xf32> -> vector<8x8xf32>
    %cst_22 = arith.constant 0.176776692 : f32
    %60 = vector.broadcast %cst_22 : f32 to vector<8x8xf32>
    %61 = arith.mulf %59, %60 : vector<8x8xf32>
    %cst_23 = arith.constant 0.000000e+00 : f32
    %62 = vector.broadcast %cst_23 : f32 to vector<8x8xf32>
    %63 = arith.cmpf ogt, %58, %62 : vector<8x8xf32>
    %cst_24 = arith.constant -1.000000e+09 : f32
    %64 = vector.broadcast %cst_24 : f32 to vector<8x8xf32>
    %65 = arith.select %63, %61, %64 : vector<8x8xi1>, vector<8x8xf32>
    %cst_25 = arith.constant dense<0xFF800000> : vector<8xf32>
    %66 = vector.multi_reduction <maximumf>, %65, %cst_25 [1] : vector<8x8xf32> to vector<8xf32>
    %67 = vector.shape_cast %66 : vector<8xf32> to vector<8x1xf32>
    %68 = vector.broadcast %67 : vector<8x1xf32> to vector<8x8xf32>
    %69 = arith.subf %65, %68 : vector<8x8xf32>
    %70 = math.exp %69 : vector<8x8xf32>
    %cst_26 = arith.constant dense<0.000000e+00> : vector<8xf32>
    %71 = vector.multi_reduction <add>, %70, %cst_26 [1] : vector<8x8xf32> to vector<8xf32>
    %72 = vector.shape_cast %71 : vector<8xf32> to vector<8x1xf32>
    %73 = tpu.reciprocal %72 {approx = true} : vector<8x1xf32> -> vector<8x1xf32>
    %74 = vector.broadcast %73 : vector<8x1xf32> to vector<8x8xf32>
    %75 = arith.mulf %70, %74 : vector<8x8xf32>
    %cst_27 = arith.constant dense<0.000000e+00> : vector<8x32xf32>
    %76 = tpu.matmul %75, %52, %cst_27 {dimension_numbers = #tpu.dot_dimension_numbers<[1], [0], [0], [1], [0, 0, 1, 1], [], []>} : vector<8x8xf32>, vector<8x32xf32>, vector<8x32xf32> -> vector<8x32xf32>
    %77 = tpu.concatenate %49, %76 in 0 : vector<8x32xf32>, vector<8x32xf32> -> vector<16x32xf32>
    %c0_28 = arith.constant 0 : index
    %c0_29 = arith.constant 0 : index
    %78 = vector.load %arg10[%c0_28, %c0_29] : memref<8x32xf32, #tpu.memory_space<vmem>>, vector<1x32xf32>
    %79 = vector.shape_cast %78 : vector<1x32xf32> to vector<32xf32>
    %c1 = arith.constant 1 : index
    %c0_30 = arith.constant 0 : index
    %80 = vector.load %arg10[%c1, %c0_30] : memref<8x32xf32, #tpu.memory_space<vmem>>, vector<1x32xf32>
    %81 = vector.shape_cast %80 : vector<1x32xf32> to vector<32xf32>
    %c2 = arith.constant 2 : index
    %c0_31 = arith.constant 0 : index
    %82 = vector.load %arg10[%c2, %c0_31] : memref<8x32xf32, #tpu.memory_space<vmem>>, vector<1x32xf32>
    %83 = vector.shape_cast %82 : vector<1x32xf32> to vector<32xf32>
    %c3 = arith.constant 3 : index
    %c0_32 = arith.constant 0 : index
    %84 = vector.load %arg10[%c3, %c0_32] : memref<8x32xf32, #tpu.memory_space<vmem>>, vector<1x32xf32>
    %85 = vector.shape_cast %84 : vector<1x32xf32> to vector<32xf32>
    %c4 = arith.constant 4 : index
    %c0_33 = arith.constant 0 : index
    %86 = vector.load %arg10[%c4, %c0_33] : memref<8x32xf32, #tpu.memory_space<vmem>>, vector<1x32xf32>
    %87 = vector.shape_cast %86 : vector<1x32xf32> to vector<32xf32>
    %c5 = arith.constant 5 : index
    %c0_34 = arith.constant 0 : index
    %88 = vector.load %arg10[%c5, %c0_34] : memref<8x32xf32, #tpu.memory_space<vmem>>, vector<1x32xf32>
    %89 = vector.shape_cast %88 : vector<1x32xf32> to vector<32xf32>
    %c6 = arith.constant 6 : index
    %c0_35 = arith.constant 0 : index
    %90 = vector.load %arg10[%c6, %c0_35] : memref<8x32xf32, #tpu.memory_space<vmem>>, vector<1x32xf32>
    %91 = vector.shape_cast %90 : vector<1x32xf32> to vector<32xf32>
    %c7 = arith.constant 7 : index
    %c0_36 = arith.constant 0 : index
    %92 = vector.load %arg10[%c7, %c0_36] : memref<8x32xf32, #tpu.memory_space<vmem>>, vector<1x32xf32>
    %93 = vector.shape_cast %92 : vector<1x32xf32> to vector<32xf32>
    %c0_37 = arith.constant 0 : index
    %c0_38 = arith.constant 0 : index
    %94 = vector.load %arg7[%c0_37, %c0_38] : memref<32x32xf32, #tpu.memory_space<vmem>>, vector<32x32xf32>
    %cst_39 = arith.constant dense<0.000000e+00> : vector<16x32xf32>
    %95 = tpu.matmul %77, %94, %cst_39 {dimension_numbers = #tpu.dot_dimension_numbers<[1], [0], [0], [1], [0, 0, 1, 1], [], []>} : vector<16x32xf32>, vector<32x32xf32>, vector<16x32xf32> -> vector<16x32xf32>
    %96 = vector.shape_cast %79 : vector<32xf32> to vector<1x32xf32>
    %97 = vector.broadcast %96 : vector<1x32xf32> to vector<16x32xf32>
    %98 = arith.addf %95, %97 : vector<16x32xf32>
    %99 = arith.addf %98, %17 : vector<16x32xf32>
    %cst_40 = arith.constant dense<0.000000e+00> : vector<16xf32>
    %100 = vector.multi_reduction <add>, %99, %cst_40 [1] : vector<16x32xf32> to vector<16xf32>
    %101 = vector.shape_cast %100 : vector<16xf32> to vector<16x1xf32>
    %cst_41 = arith.constant 3.200000e+01 : f32
    %102 = vector.broadcast %cst_41 : f32 to vector<16x1xf32>
    %103 = arith.divf %101, %102 : vector<16x1xf32>
    %104 = vector.broadcast %103 : vector<16x1xf32> to vector<16x32xf32>
    %105 = arith.subf %99, %104 : vector<16x32xf32>
    %106 = arith.mulf %105, %105 : vector<16x32xf32>
    %cst_42 = arith.constant dense<0.000000e+00> : vector<16xf32>
    %107 = vector.multi_reduction <add>, %106, %cst_42 [1] : vector<16x32xf32> to vector<16xf32>
    %108 = vector.shape_cast %107 : vector<16xf32> to vector<16x1xf32>
    %cst_43 = arith.constant 3.200000e+01 : f32
    %109 = vector.broadcast %cst_43 : f32 to vector<16x1xf32>
    %110 = arith.divf %108, %109 : vector<16x1xf32>
    %111 = vector.broadcast %103 : vector<16x1xf32> to vector<16x32xf32>
    %112 = arith.subf %99, %111 : vector<16x32xf32>
    %cst_44 = arith.constant 9.99999974E-6 : f32
    %113 = vector.broadcast %cst_44 : f32 to vector<16x1xf32>
    %114 = arith.addf %110, %113 : vector<16x1xf32>
    %115 = math.rsqrt %114 : vector<16x1xf32>
    %116 = vector.broadcast %115 : vector<16x1xf32> to vector<16x32xf32>
    %117 = arith.mulf %112, %116 : vector<16x32xf32>
    %118 = vector.shape_cast %83 : vector<32xf32> to vector<1x32xf32>
    %119 = vector.broadcast %118 : vector<1x32xf32> to vector<16x32xf32>
    %120 = arith.mulf %117, %119 : vector<16x32xf32>
    %121 = vector.shape_cast %85 : vector<32xf32> to vector<1x32xf32>
    %122 = vector.broadcast %121 : vector<1x32xf32> to vector<16x32xf32>
    %123 = arith.addf %120, %122 : vector<16x32xf32>
    %124 = arith.addf %17, %123 : vector<16x32xf32>
    %cst_45 = arith.constant dense<0.000000e+00> : vector<16xf32>
    %125 = vector.multi_reduction <add>, %124, %cst_45 [1] : vector<16x32xf32> to vector<16xf32>
    %126 = vector.shape_cast %125 : vector<16xf32> to vector<16x1xf32>
    %cst_46 = arith.constant 3.200000e+01 : f32
    %127 = vector.broadcast %cst_46 : f32 to vector<16x1xf32>
    %128 = arith.divf %126, %127 : vector<16x1xf32>
    %129 = vector.broadcast %128 : vector<16x1xf32> to vector<16x32xf32>
    %130 = arith.subf %124, %129 : vector<16x32xf32>
    %131 = arith.mulf %130, %130 : vector<16x32xf32>
    %cst_47 = arith.constant dense<0.000000e+00> : vector<16xf32>
    %132 = vector.multi_reduction <add>, %131, %cst_47 [1] : vector<16x32xf32> to vector<16xf32>
    %133 = vector.shape_cast %132 : vector<16xf32> to vector<16x1xf32>
    %cst_48 = arith.constant 3.200000e+01 : f32
    %134 = vector.broadcast %cst_48 : f32 to vector<16x1xf32>
    %135 = arith.divf %133, %134 : vector<16x1xf32>
    %136 = vector.broadcast %128 : vector<16x1xf32> to vector<16x32xf32>
    %137 = arith.subf %124, %136 : vector<16x32xf32>
    %cst_49 = arith.constant 9.99999974E-6 : f32
    %138 = vector.broadcast %cst_49 : f32 to vector<16x1xf32>
    %139 = arith.addf %135, %138 : vector<16x1xf32>
    %140 = math.rsqrt %139 : vector<16x1xf32>
    %141 = vector.broadcast %140 : vector<16x1xf32> to vector<16x32xf32>
    %142 = arith.mulf %137, %141 : vector<16x32xf32>
    %143 = vector.shape_cast %87 : vector<32xf32> to vector<1x32xf32>
    %144 = vector.broadcast %143 : vector<1x32xf32> to vector<16x32xf32>
    %145 = arith.mulf %142, %144 : vector<16x32xf32>
    %146 = vector.shape_cast %89 : vector<32xf32> to vector<1x32xf32>
    %147 = vector.broadcast %146 : vector<1x32xf32> to vector<16x32xf32>
    %148 = arith.addf %145, %147 : vector<16x32xf32>
    %c0_50 = arith.constant 0 : index
    %c0_51 = arith.constant 0 : index
    %149 = vector.load %arg8[%c0_50, %c0_51] : memref<32x32xf32, #tpu.memory_space<vmem>>, vector<32x32xf32>
    %cst_52 = arith.constant dense<0.000000e+00> : vector<16x32xf32>
    %150 = tpu.matmul %148, %149, %cst_52 {dimension_numbers = #tpu.dot_dimension_numbers<[1], [0], [0], [1], [0, 0, 1, 1], [], []>} : vector<16x32xf32>, vector<32x32xf32>, vector<16x32xf32> -> vector<16x32xf32>
    %151 = vector.shape_cast %81 : vector<32xf32> to vector<1x32xf32>
    %152 = vector.broadcast %151 : vector<1x32xf32> to vector<16x32xf32>
    %153 = arith.addf %150, %152 : vector<16x32xf32>
    %cst_53 = arith.constant 0.000000e+00 : f32
    %154 = vector.broadcast %cst_53 : f32 to vector<16x32xf32>
    %155 = arith.maximumf %153, %154 : vector<16x32xf32>
    %156 = arith.addf %148, %155 : vector<16x32xf32>
    %cst_54 = arith.constant dense<0.000000e+00> : vector<16xf32>
    %157 = vector.multi_reduction <add>, %156, %cst_54 [1] : vector<16x32xf32> to vector<16xf32>
    %158 = vector.shape_cast %157 : vector<16xf32> to vector<16x1xf32>
    %cst_55 = arith.constant 3.200000e+01 : f32
    %159 = vector.broadcast %cst_55 : f32 to vector<16x1xf32>
    %160 = arith.divf %158, %159 : vector<16x1xf32>
    %161 = vector.broadcast %160 : vector<16x1xf32> to vector<16x32xf32>
    %162 = arith.subf %156, %161 : vector<16x32xf32>
    %163 = arith.mulf %162, %162 : vector<16x32xf32>
    %cst_56 = arith.constant dense<0.000000e+00> : vector<16xf32>
    %164 = vector.multi_reduction <add>, %163, %cst_56 [1] : vector<16x32xf32> to vector<16xf32>
    %165 = vector.shape_cast %164 : vector<16xf32> to vector<16x1xf32>
    %cst_57 = arith.constant 3.200000e+01 : f32
    %166 = vector.broadcast %cst_57 : f32 to vector<16x1xf32>
    %167 = arith.divf %165, %166 : vector<16x1xf32>
    %168 = vector.broadcast %160 : vector<16x1xf32> to vector<16x32xf32>
    %169 = arith.subf %156, %168 : vector<16x32xf32>
    %cst_58 = arith.constant 9.99999974E-6 : f32
    %170 = vector.broadcast %cst_58 : f32 to vector<16x1xf32>
    %171 = arith.addf %167, %170 : vector<16x1xf32>
    %172 = math.rsqrt %171 : vector<16x1xf32>
    %173 = vector.broadcast %172 : vector<16x1xf32> to vector<16x32xf32>
    %174 = arith.mulf %169, %173 : vector<16x32xf32>
    %175 = vector.shape_cast %91 : vector<32xf32> to vector<1x32xf32>
    %176 = vector.broadcast %175 : vector<1x32xf32> to vector<16x32xf32>
    %177 = arith.mulf %174, %176 : vector<16x32xf32>
    %178 = vector.shape_cast %93 : vector<32xf32> to vector<1x32xf32>
    %179 = vector.broadcast %178 : vector<1x32xf32> to vector<16x32xf32>
    %180 = arith.addf %177, %179 : vector<16x32xf32>
    %c0_59 = arith.constant 0 : index
    %c0_60 = arith.constant 0 : index
    %181 = vector.load %arg11[%c0_59, %c0_60] : memref<16x32xf32, #tpu.memory_space<vmem>>, vector<16x32xf32>
    tpu.vector_store %arg11[%c0_59, %c0_60], %180 {strides = array<i32>} : memref<16x32xf32, #tpu.memory_space<vmem>>, vector<16x32xf32>,
    return
  }
  func.func @transform_0(%arg0: i32) -> (i32, i32) {
    %c0_i32 = arith.constant 0 : i32
    %c0_i32_0 = arith.constant 0 : i32
    %c0_i32_1 = arith.constant 0 : i32
    return %c0_i32, %c0_i32_0 : i32, i32
  }
  func.func @transform_1(%arg0: i32) -> (i32, i32) {
    %c0_i32 = arith.constant 0 : i32
    %c0_i32_0 = arith.constant 0 : i32
    %c0_i32_1 = arith.constant 0 : i32
    return %c0_i32, %c0_i32_0 : i32, i32
  }
  func.func @transform_2(%arg0: i32) -> (i32, i32) {
    %c0_i32 = arith.constant 0 : i32
    %c0_i32_0 = arith.constant 0 : i32
    %c0_i32_1 = arith.constant 0 : i32
    return %c0_i32, %c0_i32_0 : i32, i32
  }
  func.func @transform_3(%arg0: i32) -> (i32, i32, i32) {
    %c0_i32 = arith.constant 0 : i32
    %c0_i32_0 = arith.constant 0 : i32
    %c0_i32_1 = arith.constant 0 : i32
    %c0_i32_2 = arith.constant 0 : i32
    return %c0_i32, %c0_i32_0, %c0_i32_1 : i32, i32, i32
  }
  func.func @transform_4(%arg0: i32) -> (i32, i32) {
    %c0_i32 = arith.constant 0 : i32
    %c0_i32_0 = arith.constant 0 : i32
    %c0_i32_1 = arith.constant 0 : i32
    return %c0_i32, %c0_i32_0 : i32, i32
  }
  func.func @transform_5(%arg0: i32) -> (i32, i32) {
    %c0_i32 = arith.constant 0 : i32
    %c0_i32_0 = arith.constant 0 : i32
    %c0_i32_1 = arith.constant 0 : i32
    return %c0_i32, %c0_i32_0 : i32, i32
  }
  func.func @transform_6(%arg0: i32) -> (i32, i32) {
    %c0_i32 = arith.constant 0 : i32
    %c0_i32_0 = arith.constant 0 : i32
    %c0_i32_1 = arith.constant 0 : i32
    return %c0_i32, %c0_i32_0 : i32, i32
  }
  func.func @transform_7(%arg0: i32) -> (i32, i32) {
    %c0_i32 = arith.constant 0 : i32
    %c0_i32_0 = arith.constant 0 : i32
    %c0_i32_1 = arith.constant 0 : i32
    return %c0_i32, %c0_i32_0 : i32, i32
  }
  func.func @transform_8(%arg0: i32) -> (i32, i32) {
    %c0_i32 = arith.constant 0 : i32
    %c0_i32_0 = arith.constant 0 : i32
    %c0_i32_1 = arith.constant 0 : i32
    return %c0_i32, %c0_i32_0 : i32, i32
  }
  func.func @transform_9(%arg0: i32) -> (i32, i32) {
    %c0_i32 = arith.constant 0 : i32
    %c0_i32_0 = arith.constant 0 : i32
    %c0_i32_1 = arith.constant 0 : i32
    return %c0_i32, %c0_i32_0 : i32, i32
  }
  func.func @transform_10(%arg0: i32) -> (i32, i32) {
    %c0_i32 = arith.constant 0 : i32
    %c0_i32_0 = arith.constant 0 : i32
    %c0_i32_1 = arith.constant 0 : i32
    return %c0_i32, %c0_i32_0 : i32, i32
  }
}

</mosaic_0001>

<bundles_post_ra>
// kernel: tpu_custom_call.1
= control target key start
LH: loop header
LB: loop body
LE: loop exit
PB: predicated region body
PF: predicated region fallthrough
CT: control target
= control target key end

     0   :  { %15 = vsyncpa [#allocation3], 0  ;;  %s1509_s0 = inlined_call_operand.hbm [shape: f32[16,32], index: 0, kind: input, shape index: {}]   ;;  %s1510_s1 = inlined_call_operand.hbm [shape: f32[16,32], index: 1, kind: input, shape index: {}]   ;;  %s1511_s2 = inlined_call_operand.hbm [shape: f32[2,32], index: 2, kind: input, shape index: {}]   ;;  %s1512_s3 = inlined_call_operand.vmem [shape: f32[2,8,1], index: 3, kind: input, shape index: {}]   ;;  %s1513_s4 = inlined_call_operand.hbm [shape: f32[2,8], index: 4, kind: input, shape index: {}]   ;;  %s1514_s5 = inlined_call_operand.vmem [shape: f32[32,96], index: 5, kind: input, shape index: {}]   ;;  %s1515_s6 = inlined_call_operand.hbm [shape: f32[32,32], index: 6, kind: input, shape index: {}]   ;;  %s1516_s7 = inlined_call_operand.hbm [shape: f32[32,32], index: 7, kind: input, shape index: {}]   ;;  %s1517_s8 = inlined_call_operand.vmem [shape: f32[1,96], index: 8, kind: input, shape index: {}]   ;;  %s1518_s9 = inlined_call_operand.vmem [shape: f32[8,32], index: 9, kind: input, shape index: {}]   ;;  %s1519_s10 = inlined_call_operand.hbm [shape: f32[16,32], index: 10, kind: output, shape index: {}]  }
   0x1   :  { %16 = vsyncpa [#allocation6], 0 }
   0x2   :  { %17 = vsyncpa [#allocation9], 0 }
   0x3   :  { %18 = vsyncpa [#allocation12], 0 }
   0x4   :  { %19 = vsyncpa [#allocation4], 0  ;;  %s1237_s13 = smov [#allocation5]   ;;  %s1238_s15 = smov [#allocation8]  }
   0x5   :  { %s37_s14 = sshll.u32 %s1237_s13, 4  ;;  %s62_s16 = sshll.u32 %s1238_s15, 4  ;;  %s38_s14 = int_to_ptr.vmem [resolvable:$true] %s37_s14  ;;  %s63_s16 = int_to_ptr.vmem [resolvable:$true] %s62_s16 }
   0x6   :  { %s1073_s19 = scalar_lea.hbm %s1510_s1, 256 }
   0x7   :  { %p1074_p0 = scmp.ne.s32.totalorder %s1510_s1, %s1073_s19  ;;  %p1077_p1 = scmp.lt.u32.totalorder %s1073_s19, %s1510_s1 }
   0x9   :  { %p1079_p2 = pnand %p1077_p1, %p1074_p0 }
   0xb   :  { %1082 = shalt.err (!%p1079_p2)
}
   0xc   :  { %s1083_s24 = scalar_lea.vmem %s38_s14, 256  ;;  %p1088_p4 = scmp.lt.s32.totalorder %s38_s14, %s38_s14 }
   0xd   :  { %p1084_p3 = scmp.ne.s32.totalorder %s38_s14, %s1083_s24  ;;  %p1089_p5 = scmp.lt.s32.totalorder %s1083_s24, %s1083_s24 }
   0xf   :  { %p1090_p6 = por %p1089_p5, %p1088_p4 }
  0x11   :  { %p1091_p7 = pnand %p1090_p6, %p1084_p3 }
  0x13   :  { %1094 = shalt.err (!%p1091_p7)
}
  0x14   :  { %s1239_s25 = smov 128   ;;  %s1240_s26 = smov 8  }
  0x15   :  { %43 = dma.hbm_to_vmem [thread:$0]  %s1510_s1, 256, %s38_s14, [#allocation6], %s1239_s25, %s1239_s25, %s1240_s26  }
  0x16   :  { %s1095_s11 = scalar_lea.hbm %s1513_s4, 32 }
  0x17   :  { %p1096_p8 = scmp.ne.s32.totalorder %s1513_s4, %s1095_s11  ;;  %p1099_p9 = scmp.lt.u32.totalorder %s1095_s11, %s1513_s4 }
  0x19   :  { %p1101_p10 = pnand %p1099_p9, %p1096_p8 }
  0x1b   :  { %1104 = shalt.err (!%p1101_p10)
}
  0x1c   :  { %s1105_s18 = scalar_lea.vmem %s63_s16, 32  ;;  %p1110_p12 = scmp.lt.s32.totalorder %s63_s16, %s63_s16 }
  0x1d   :  { %p1106_p11 = scmp.ne.s32.totalorder %s63_s16, %s1105_s18  ;;  %p1111_p13 = scmp.lt.s32.totalorder %s1105_s18, %s1105_s18 }
  0x1f   :  { %p1112_p0 = por %p1111_p13, %p1110_p12 }
  0x21   :  { %p1113_p1 = pnand %p1112_p0, %p1106_p11 }
  0x23   :  { %1116 = shalt.err (!%p1113_p1)
}
  0x24   :  { %65 = dma.hbm_to_vmem [thread:$0]  %s1513_s4, 32, %s63_s16, [#allocation9]  }
  0x25   :  { %s1241_s19 = smov [#allocation2]   ;;  %s1242_s21 = smov [#allocation7]  }
  0x26   :  { %s25_s20 = sshll.u32 %s1241_s19, 4  ;;  %s50_s22 = sshll.u32 %s1242_s21, 4  ;;  %s26_s20 = int_to_ptr.vmem [resolvable:$true] %s25_s20  ;;  %s51_s22 = int_to_ptr.vmem [resolvable:$true] %s50_s22 }
  0x27   :  { %s1117_s27 = scalar_lea.hbm %s1509_s0, 256 }
  0x28   :  { %p1118_p2 = scmp.ne.s32.totalorder %s1509_s0, %s1117_s27  ;;  %p1121_p3 = scmp.lt.u32.totalorder %s1117_s27, %s1509_s0 }
  0x2a   :  { %p1123_p4 = pnand %p1121_p3, %p1118_p2 }
  0x2c   :  { %1126 = shalt.err (!%p1123_p4)
}
  0x2d   :  { %s1127_s4 = scalar_lea.vmem %s26_s20, 256  ;;  %p1132_p6 = scmp.lt.s32.totalorder %s26_s20, %s26_s20 }
  0x2e   :  { %p1128_p5 = scmp.ne.s32.totalorder %s26_s20, %s1127_s4  ;;  %p1133_p7 = scmp.lt.s32.totalorder %s1127_s4, %s1127_s4 }
  0x30   :  { %p1134_p8 = por %p1133_p7, %p1132_p6 }
  0x32   :  { %p1135_p9 = pnand %p1134_p8, %p1128_p5 }
  0x34   :  { %1138 = shalt.err (!%p1135_p9)
}
  0x35   :  { %31 = dma.hbm_to_vmem [thread:$0]  %s1509_s0, 256, %s26_s20, [#allocation3], %s1239_s25, %s1239_s25, %s1240_s26  }
  0x36   :  { %s1139_s17 = scalar_lea.hbm %s1511_s2, 32 }
  0x37   :  { %p1140_p10 = scmp.ne.s32.totalorder %s1511_s2, %s1139_s17  ;;  %p1143_p11 = scmp.lt.u32.totalorder %s1139_s17, %s1511_s2 }
  0x39   :  { %p1145_p12 = pnand %p1143_p11, %p1140_p10 }
  0x3b   :  { %1148 = shalt.err (!%p1145_p12)
}
  0x3c   :  { %s1149_s21 = scalar_lea.vmem %s51_s22, 32  ;;  %p1154_p0 = scmp.lt.s32.totalorder %s51_s22, %s51_s22 }
  0x3d   :  { %p1150_p13 = scmp.ne.s32.totalorder %s51_s22, %s1149_s21  ;;  %p1155_p1 = scmp.lt.s32.totalorder %s1149_s21, %s1149_s21 }
  0x3f   :  { %p1156_p2 = por %p1155_p1, %p1154_p0 }
  0x41   :  { %p1157_p3 = pnand %p1156_p2, %p1150_p13 }
  0x43   :  { %1160 = shalt.err (!%p1157_p3)
}
  0x44   :  { %53 = dma.hbm_to_vmem [thread:$0]  %s1511_s2, 32, %s51_s22, [#allocation6]  }
  0x45   :  { %s1243_s23 = smov [#allocation10]   ;;  %s1244_s27 = smov [#allocation11]  }
  0x46   :  { %s73_s24 = sshll.u32 %s1243_s23, 4  ;;  %s85_s28 = sshll.u32 %s1244_s27, 4  ;;  %s74_s24 = int_to_ptr.vmem [resolvable:$true] %s73_s24  ;;  %s1360_s28 = int_to_ptr.vmem [resolvable:$true] %s85_s28 }
  0x47   :  { %s1161_s11 = scalar_lea.hbm %s1515_s6, 512 }
  0x48   :  { %p1162_p4 = scmp.ne.s32.totalorder %s1515_s6, %s1161_s11  ;;  %p1165_p5 = scmp.lt.u32.totalorder %s1161_s11, %s1515_s6 }
  0x4a   :  { %p1167_p6 = pnand %p1165_p5, %p1162_p4 }
  0x4c   :  { %1170 = shalt.err (!%p1167_p6)
}
  0x4d   :  { %s1171_s2 = scalar_lea.vmem %s74_s24, 512  ;;  %p1176_p8 = scmp.lt.s32.totalorder %s74_s24, %s74_s24 }
  0x4e   :  { %p1172_p7 = scmp.ne.s32.totalorder %s74_s24, %s1171_s2  ;;  %p1177_p9 = scmp.lt.s32.totalorder %s1171_s2, %s1171_s2 }
  0x50   :  { %p1178_p10 = por %p1177_p9, %p1176_p8 }
  0x52   :  { %p1179_p11 = pnand %p1178_p10, %p1172_p7 }
  0x54   :  { %1182 = shalt.err (!%p1179_p11)
}
  0x55   :  { %79 = dma.hbm_to_vmem [thread:$0]  %s1515_s6, 512, %s74_s24, [#allocation9], %s1239_s25, %s1239_s25, %s1240_s26  }
  0x56   :  { %s1183_s1 = scalar_lea.hbm %s1516_s7, 512 }
  0x57   :  { %p1184_p12 = scmp.ne.s32.totalorder %s1516_s7, %s1183_s1  ;;  %p1187_p13 = scmp.lt.u32.totalorder %s1183_s1, %s1516_s7 }
  0x59   :  { %p1189_p0 = pnand %p1187_p13, %p1184_p12 }
  0x5b   :  { %1192 = shalt.err (!%p1189_p0)
}
  0x5c   :  { %s1193_s20 = scalar_lea.vmem %s1360_s28, 512  ;;  %p1198_p2 = scmp.lt.s32.totalorder %s1360_s28, %s1360_s28 }
  0x5d   :  { %p1194_p1 = scmp.ne.s32.totalorder %s1360_s28, %s1193_s20  ;;  %p1199_p3 = scmp.lt.s32.totalorder %s1193_s20, %s1193_s20 }
  0x5f   :  { %p1200_p4 = por %p1199_p3, %p1198_p2 }
  0x61   :  { %p1201_p5 = pnand %p1200_p4, %p1194_p1 }
  0x63   :  { %1204 = shalt.err (!%p1201_p5)
}
  0x64   :  { %91 = dma.hbm_to_vmem [thread:$0]  %s1516_s7, 512, %s1360_s28, [#allocation12], %s1239_s25, %s1239_s25, %s1240_s26  }
  0x65   :  { %1227 = dma.done.wait [#allocation3], 256  }
  0x66   :  { %1228 = vsyncadd [#allocation3], 4294967040 }
  0x67   :  { %1229 = dma.done.wait [#allocation6], 288  }
  0x68   :  { %1230 = vsyncadd [#allocation6], 4294967008 }
  0x69   :  { %1231 = dma.done.wait [#allocation9], 544  }
  0x6a   :  { %1232 = vsyncadd [#allocation9], 4294966752 }
  0x6b   :  { %1233 = dma.done.wait [#allocation12], 512  }
  0x6c   :  { %1234 = vsyncadd [#allocation12], 4294966784  ;;  %v123_v0 = vlaneseq  ;;  %v134_v4 = vld [vmem:[%s1514_s5] sm:$0xff]  ;;  %v135_v5 = vld [vmem:[%s1514_s5 + $0x8] sm:$0xff]  ;;  %vm145_vm0 = vcmask 261120   ;;  %v1245_v21 = vmov 0.0  }
  0x6d   :  { %v136_v6 = vld [vmem:[%s1514_s5 + $0x10] sm:$0xff]  ;;  %v1013_v7 = vpack.c.bf16 %v135_v5, %v134_v4  ;;  %v137_v8 = vld [vmem:[%s1514_s5 + $0x18] sm:$0xff]  ;;  %v114_v9 = vld [vmem:[#allocation2] sm:$0xff]  ;;  %971 = vmatprep.subr.mxu1 %v1245_v21  ;;  %vm1246_vm1 = vmmov 0   ;;  %v1247_v24 = vmov 0   ;;  %s1248_s15 = smov 96  }
  0x6e   :  { %v124_v1 = vshrl.u32 %v123_v0, 7  ;;  %v116_v10 = vld [vmem:[#allocation5] sm:$0xff]  ;;  %v1017_v11 = vpack.c.bf16 %v137_v8, %v136_v6  ;;  %v118_v12 = vld [vmem:[#allocation7] sm:$0x3]  ;;  %v115_v14 = vld [vmem:[#allocation2 + $0x8] sm:$0xff]  ;;  %973 = vmatprep.mubr.msk.f32.mxu1 %vm1246_vm1, %v1245_v21  ;;  %1051 = vset.pattern.permute.xlu1 %v1247_v24  ;;  %vm317_vm3 = vcmask 64512  }
  0x6f   :  { %v122_v13 = vadd.f32 %v116_v10, %v114_v9  ;;  %v117_v15 = vld [vmem:[#allocation5 + $0x8] sm:$0xff]  ;;  %1014 = vmatprep.subr.bf16.mxu0 %v1013_v7  ;;  %v119_v22 = vld [vmem:[%s1512_s3] sm:$0xff]  ;;  %1052 = vset.pattern.permute.xlu0 %v1247_v24  ;;  %v120_v27 = vld [vmem:[%s1512_s3 + $0x8] sm:$0xff]  ;;  %s1249_s3 = smov 64   ;;  %s1250_s28 = smov [#allocation13]  }
  0x70   :  { %v125_v2 = vsub.s32 0, %v124_v1  ;;  %v131_v3 = vsub.s32 1, %v124_v1  ;;  %v128_v18 = vadd.f32 %v117_v15, %v115_v14  ;;  %1016 = vmatpush3.bf16.msra.mxu0 %v1013_v7  ;;  %v913_v23 = vld [vmem:[%s1517_s8] ss:$0 sm:$0xff]  ;;  %229 = vperm.xlu1 %1051, %v119_v22   ;;  %v121_v32 = vld [vmem:[#allocation8] sm:$0x3] }
  0x71   :  { %1018 = vmatprep.subr.bf16.mxu0 %v1017_v11  ;;  %v590_v60 = vld [vmem:[#allocation10] sm:$0xff]  ;;  %v591_v61 = vld [vmem:[#allocation10 + $0x8] sm:$0xff]  ;;  %v592_v6 = vld [vmem:[#allocation10 + $0x10] sm:$0xff]  ;;  %s898_s11 = sshll.u32 %s1250_s28, 4  ;;  %s899_s11 = int_to_ptr.vmem [resolvable:$true] %s898_s11 }
  0x72   :  { %v126_v16 = vrot.slane %v118_v12, %v125_v2  ;;  %v132_v17 = vrot.slane %v118_v12, %v131_v3  ;;  %v235_v33 = vrot.slane %v121_v32, %v125_v2  ;;  %v413_v36 = vrot.slane %v121_v32, %v131_v3  ;;  %v593_v7 = vld [vmem:[#allocation10 + $0x18] sm:$0xff]  ;;  %s1205_s4 = scalar_lea.vmem %s899_s11, 256  ;;  %p1210_p7 = scmp.lt.s32.totalorder %s899_s11, %s899_s11 }
  0x73   :  { %v1021_v62 = vpack.c.bf16 %v591_v61, %v590_v60  ;;  %v1025_v8 = vpack.c.bf16 %v593_v7, %v592_v6  ;;  %p1206_p6 = scmp.ne.s32.totalorder %s899_s11, %s1205_s4  ;;  %p1211_p8 = scmp.lt.s32.totalorder %s1205_s4, %s1205_s4 }
  0x74   :  { %v1409_v19 = vadd.f32 %v126_v16, %v122_v13  ;;  %v1413_v20 = vadd.f32 %v132_v17, %v128_v18  ;;  %1020 = vmatpush3.bf16.msra.mxu0 %v1017_v11  ;;  %407 = vperm.xlu1 %1051, %v120_v27   ;;  %v922_v13 = vld [vmem:[%s1518_s9] ss:$0 sm:$0xff] }
  0x75   :  { %981 = vmatprep.subr.mxu0 %v1245_v21  ;;  %p1212_p9 = por %p1211_p8, %p1210_p7 }
  0x76   :  { %968 = vmatprep.mubr.msk.f32.mxu0 %vm145_vm0, %v1409_v19 }
  0x77   :  { %969 = vmatmul.mubr.msk.f32.vlgmr.msra.gmra.mrb[0].mxu0 %vm145_vm0, %v1413_v20  ;;  %p1213_p10 = pnand %p1212_p9, %p1206_p6 }
  0x78   :  { %983 = vmatprep.mubr.msk.f32.mxu0 %vm1246_vm1, %v1245_v21 }
  0xef   :  { %v230_v34 = vpop.permute.xlu1 %229 }
  0xf0   :  { %v236_v35 = vmul.f32 %v235_v33, %v230_v34 }
  0xf2   :  { %vm315_vm2 = vcmp.gt.f32.partialorder %v236_v35, 0.0 }
  0xf3   :  { %v408_v37 = vpop.permute.xlu1 %407 }
  0xf4   :  { %v414_v41 = vmul.f32 %v413_v36, %v408_v37 }
  0xf6   :  { %vm493_vm4 = vcmp.gt.f32.partialorder %v414_v41, 0.0  ;;  %v925_v41 = vld [vmem:[%s1518_s9 + $0x2] ss:$0 sm:$0xff] }
 0x14a   :  { %v970_v25 = vpop.f32.mrb[0].mxu0 }
 0x14b   :  { %v218_v26 = vpop.f32.mrb[1].mxu0  ;;  %v224_v29 = vadd.f32 %v970_v25, %v913_v23 }
 0x14c   :  { %v219_v28 = vadd.f32 %v913_v23, %v218_v26 }
 0x14e   :  { %238 = vrot.lane.b32.xlu0 %v219_v28, %s1248_s15 }
 0x152   :  { %416 = vrot.lane.b32.xlu0 %v224_v29, %s1248_s15 }
 0x1c0   :  { %v239_v30 = vpop.permute.xlu0 %238 }
 0x1c1   :  { %972 = vmatpush3.xpose.msk.msra.mxu1 %vm145_vm0, %v239_v30 }
 0x1c2   :  { %976 = vmatprep.subr.mxu1 %v1245_v21 }
 0x1c4   :  { %974 = vmatmul.mubr.msk.f32.vlgmr.msra.gmra.mrb[0].mxu1 %vm145_vm0, %v219_v28  ;;  %v417_v31 = vpop.permute.xlu0 %416 }
 0x1c5   :  { %982 = vmatpush3.xpose.msk.msra.mxu0 %vm145_vm0, %v417_v31  ;;  %978 = vmatprep.mubr.msk.f32.mxu1 %vm1246_vm1, %v1245_v21 }
 0x1c6   :  { %1022 = vmatprep.subr.bf16.mxu0 %v1021_v62 }
 0x1c8   :  { %984 = vmatmul.mubr.msk.f32.vlgmr.msra.gmra.mrb[2].mxu0 %vm145_vm0, %v224_v29 }
 0x1c9   :  { %1024 = vmatpush3.bf16.msra.mxu0 %v1021_v62 }
 0x1ca   :  { %1026 = vmatprep.subr.bf16.mxu0 %v1025_v8 }
 0x1cd   :  { %1028 = vmatpush3.bf16.msra.mxu0 %v1025_v8 }
 0x297   :  { %v310_v38 = vpop.f32.mrb[0].mxu1 }
 0x298   :  { %v314_v39 = vmul.f32 0.17677669, %v310_v38  ;;  %v975_v40 = vpop.f32.mrb[1].mxu1 }
 0x29a   :  { %v316_v42 = vsel %vm315_vm2, %v314_v39, -1e+09 }
 0x29b   :  { %v488_v43 = vpop.f32.mrb[2].mxu0  ;;  %v318_v44 = vsel %vm317_vm3, %v316_v42, -inf }
 0x29c   :  { %v492_v45 = vmul.f32 0.17677669, %v488_v43  ;;  %319 = vmax.xlane.f32.xlu0 %v318_v44  ;;  %v985_v46 = vpop.f32.mrb[3].mxu0  ;;  %v926_v44 = vld [vmem:[%s1518_s9 + $0x3] ss:$0 sm:$0xff] }
 0x29e   :  { %v494_v47 = vsel %vm493_vm4, %v492_v45, -1e+09 }
 0x29f   :  { %v495_v48 = vsel %vm317_vm3, %v494_v47, -inf }
 0x2a0   :  { %496 = vmax.xlane.f32.xlu1 %v495_v48 }
 0x2b1   :  { %329 = vrot.lane.b32.xlu1 %v219_v28, %s1249_s3 }
 0x329   :  { %v320_v49 = vpop.xlane.xlu0 %319 }
 0x32a   :  { %v321_v50 = vsub.f32 %v316_v42, %v320_v49 }
 0x32c   :  { %v322_v53 = vmul.f32 1.442695, %v321_v50 }
 0x32d   :  { %v497_v51 = vpop.xlane.xlu1 %496 }
 0x32e   :  { %v498_v52 = vsub.f32 %v494_v47, %v497_v51 }
 0x330   :  { %v499_v54 = vmul.f32 1.442695, %v498_v52 }
 0x331   :  { %v330_v55 = vpop.permute.xlu1 %329 }
 0x332   :  { %1053 = vpow2.f32 %v499_v54  ;;  %977 = vmatpush3.msra.mxu1 %v330_v55 }
 0x333   :  { %986 = vmatprep.subr.mxu1 %v1245_v21  ;;  %1055 = vpow2.f32 %v322_v53 }
 0x33c   :  { %v1054_v56 = vpop.eup %1053 }
 0x33d   :  { %v501_v57 = vsel %vm317_vm3, %v1054_v56, 0.0  ;;  %v1056_v58 = vpop.eup %1055 }
 0x33e   :  { %502 = vadd.xlane.f32.xlu0 %v501_v57  ;;  %v324_v59 = vsel %vm317_vm3, %v1056_v58, 0.0 }
 0x342   :  { %325 = vadd.xlane.f32.xlu0 %v324_v59 }
 0x358   :  { %506 = vrot.lane.b32.xlu0 %v224_v29, %s1249_s3 }
 0x3cb   :  { %v503_v63 = vpop.xlane.xlu0 %502 }
 0x3cf   :  { %v326_v0 = vpop.xlane.xlu0 %325 }
 0x3d0   :  { %1057 = vrcp.f32 %v326_v0 }
 0x3d1   :  { %1059 = vrcp.f32 %v503_v63  ;;  %v761_v63 = vld [vmem:[#allocation11 + $0x8] sm:$0xff] }
 0x3d3   :  { %v507_v4 = vpop.permute.xlu0 %506 }
 0x3da   :  { %v1058_v1 = vpop.eup %1057 }
 0x3db   :  { %v328_v2 = vmul.f32 %v1058_v1, %v1056_v58  ;;  %v1060_v3 = vpop.eup %1059  ;;  %v762_v1 = vld [vmem:[#allocation11 + $0x10] sm:$0xff] }
 0x3dc   :  { %v505_v5 = vmul.f32 %v1060_v3, %v1054_v56 }
 0x3dd   :  { %979 = vmatmul.mubr.msk.f32.vlgmr.msra.gmra.mrb[2].mxu1 %vm317_vm3, %v328_v2  ;;  %v763_v2 = vld [vmem:[#allocation11 + $0x18] sm:$0xff] }
 0x3de   :  { %987 = vmatpush3.msra.mxu1 %v507_v4  ;;  %988 = vmatprep.mubr.msk.f32.mxu1 %vm1246_vm1, %v1245_v21  ;;  %v1033_v3 = vpack.c.bf16 %v763_v2, %v762_v1 }
 0x3e1   :  { %989 = vmatmul.mubr.msk.f32.vlgmr.msra.gmra.mrb[4].mxu1 %vm317_vm3, %v505_v5 }
 0x4b0   :  { %v401_v9 = vpop.f32.mrb[2].mxu1 }
 0x4b1   :  { %v980_v10 = vpop.f32.mrb[3].mxu1  ;;  %999 = vmatprep.mubr.msk.f32.mxu0 %vm145_vm0, %v401_v9 }
 0x4b4   :  { %v578_v11 = vpop.f32.mrb[4].mxu1 }
 0x4b5   :  { %v990_v12 = vpop.f32.mrb[5].mxu1  ;;  %1000 = vmatmul.mubr.msk.f32.vlgmr.msra.gmra.mrb[4].mxu0 %vm145_vm0, %v578_v11  ;;  %v927_v11 = vld [vmem:[%s1518_s9 + $0x4] ss:$0 sm:$0xff] }
 0x588   :  { %v1001_v14 = vpop.f32.mrb[4].mxu0 }
 0x589   :  { %v676_v15 = vadd.f32 %v1001_v14, %v922_v13  ;;  %v670_v16 = vpop.f32.mrb[5].mxu0 }
 0x58a   :  { %v671_v17 = vadd.f32 %v922_v13, %v670_v16 }
 0x58b   :  { %v680_v18 = vadd.f32 %v676_v15, %v1413_v20  ;;  %v928_v15 = vld [vmem:[%s1518_s9 + $0x5] ss:$0 sm:$0xff] }
 0x58c   :  { %v679_v21 = vadd.f32 %v671_v17, %v1409_v19 }
 0x58d   :  { %v684_v22 = vsel %vm145_vm0, %v680_v18, 0.0 }
 0x58e   :  { %685 = vadd.xlane.f32.xlu0 %v684_v22  ;;  %v681_v23 = vsel %vm145_vm0, %v679_v21, 0.0  ;;  %v929_v22 = vld [vmem:[%s1518_s9 + $0x1] ss:$0 sm:$0xff] }
 0x58f   :  { %682 = vadd.xlane.f32.xlu1 %v681_v23 }
 0x61b   :  { %v686_v24 = vpop.xlane.xlu0 %685 }
 0x61c   :  { %v689_v25 = vmul.f32 0.03125, %v686_v24  ;;  %v683_v26 = vpop.xlane.xlu1 %682 }
 0x61d   :  { %v688_v27 = vmul.f32 0.03125, %v683_v26 }
 0x61e   :  { %v691_v28 = vsub.f32 %v680_v18, %v689_v25 }
 0x61f   :  { %v690_v29 = vsub.f32 %v679_v21, %v688_v27 }
 0x620   :  { %v693_v30 = vmul.f32 %v691_v28, %v691_v28 }
 0x621   :  { %v692_v31 = vmul.f32 %v690_v29, %v690_v29 }
 0x622   :  { %v697_v32 = vsel %vm145_vm0, %v693_v30, 0.0 }
 0x623   :  { %698 = vadd.xlane.f32.xlu0 %v697_v32  ;;  %v694_v33 = vsel %vm145_vm0, %v692_v31, 0.0 }
 0x624   :  { %695 = vadd.xlane.f32.xlu1 %v694_v33 }
 0x6b0   :  { %v699_v34 = vpop.xlane.xlu0 %698 }
 0x6b1   :  { %v701_v35 = vmul.f32 0.03125, %v699_v34  ;;  %v696_v36 = vpop.xlane.xlu1 %695 }
 0x6b2   :  { %v700_v37 = vmul.f32 0.03125, %v696_v36 }
 0x6b3   :  { %v703_v38 = vadd.f32 1e-05, %v701_v35 }
 0x6b4   :  { %v702_v39 = vadd.f32 1e-05, %v700_v37 }
 0x6b5   :  { %1061 = vrsqrt.f32 %v703_v38 }
 0x6b6   :  { %1063 = vrsqrt.f32 %v702_v39 }
 0x6bf   :  { %v1062_v40 = vpop.eup %1061 }
 0x6c0   :  { %v1064_v42 = vpop.eup %1063  ;;  %v707_v43 = vmul.f32 %v1062_v40, %v691_v28 }
 0x6c1   :  { %v706_v45 = vmul.f32 %v1064_v42, %v690_v29 }
 0x6c2   :  { %v713_v46 = vmul.f32 %v925_v41, %v707_v43 }
 0x6c3   :  { %v712_v47 = vmul.f32 %v925_v41, %v706_v45 }
 0x6c4   :  { %v719_v48 = vadd.f32 %v926_v44, %v713_v46 }
 0x6c5   :  { %v718_v49 = vadd.f32 %v926_v44, %v712_v47 }
 0x6c6   :  { %v721_v50 = vadd.f32 %v719_v48, %v1413_v20 }
 0x6c7   :  { %v720_v51 = vadd.f32 %v718_v49, %v1409_v19  ;;  %v760_v19 = vld [vmem:[#allocation11] sm:$0xff] }
 0x6c8   :  { %v725_v52 = vsel %vm145_vm0, %v721_v50, 0.0  ;;  %v1029_v0 = vpack.c.bf16 %v761_v63, %v760_v19 }
 0x6c9   :  { %726 = vadd.xlane.f32.xlu0 %v725_v52  ;;  %v722_v53 = vsel %vm145_vm0, %v720_v51, 0.0 }
 0x6ca   :  { %723 = vadd.xlane.f32.xlu1 %v722_v53  ;;  %1030 = vmatprep.subr.bf16.mxu1 %v1029_v0 }
 0x6cb   :  { %1032 = vmatpush3.bf16.msra.mxu1 %v1029_v0 }
 0x6cc   :  { %1034 = vmatprep.subr.bf16.mxu1 %v1033_v3 }
 0x6cf   :  { %1036 = vmatpush3.bf16.msra.mxu1 %v1033_v3 }
 0x756   :  { %v727_v54 = vpop.xlane.xlu0 %726 }
 0x757   :  { %v729_v55 = vmul.f32 0.03125, %v727_v54  ;;  %v724_v56 = vpop.xlane.xlu1 %723  ;;  %v933_v54 = vld [vmem:[%s1518_s9 + $0x7] ss:$0 sm:$0xff] }
 0x758   :  { %v728_v57 = vmul.f32 0.03125, %v724_v56 }
 0x759   :  { %v731_v58 = vsub.f32 %v721_v50, %v729_v55  ;;  %v932_v50 = vld [vmem:[%s1518_s9 + $0x6] ss:$0 sm:$0xff] }
 0x75a   :  { %v730_v59 = vsub.f32 %v720_v51, %v728_v57 }
 0x75b   :  { %v733_v60 = vmul.f32 %v731_v58, %v731_v58 }
 0x75c   :  { %v732_v61 = vmul.f32 %v730_v59, %v730_v59 }
 0x75d   :  { %v737_v62 = vsel %vm145_vm0, %v733_v60, 0.0 }
 0x75e   :  { %738 = vadd.xlane.f32.xlu0 %v737_v62  ;;  %v734_v20 = vsel %vm145_vm0, %v732_v61, 0.0 }
 0x75f   :  { %735 = vadd.xlane.f32.xlu1 %v734_v20 }
 0x7eb   :  { %v739_v4 = vpop.xlane.xlu0 %738 }
 0x7ec   :  { %v741_v5 = vmul.f32 0.03125, %v739_v4  ;;  %v736_v6 = vpop.xlane.xlu1 %735 }
 0x7ed   :  { %v740_v7 = vmul.f32 0.03125, %v736_v6 }
 0x7ee   :  { %v743_v8 = vadd.f32 1e-05, %v741_v5 }
 0x7ef   :  { %v742_v9 = vadd.f32 1e-05, %v740_v7 }
 0x7f0   :  { %1065 = vrsqrt.f32 %v743_v8 }
 0x7f1   :  { %1067 = vrsqrt.f32 %v742_v9 }
 0x7fa   :  { %v1066_v10 = vpop.eup %1065 }
 0x7fb   :  { %v1068_v12 = vpop.eup %1067  ;;  %v747_v13 = vmul.f32 %v1066_v10, %v731_v58 }
 0x7fc   :  { %v746_v14 = vmul.f32 %v1068_v12, %v730_v59 }
 0x7fd   :  { %v753_v16 = vmul.f32 %v927_v11, %v747_v13 }
 0x7fe   :  { %v752_v17 = vmul.f32 %v927_v11, %v746_v14 }
 0x7ff   :  { %v759_v21 = vadd.f32 %v928_v15, %v753_v16 }
 0x800   :  { %v758_v18 = vadd.f32 %v928_v15, %v752_v17 }
 0x802   :  { %1010 = vmatprep.mubr.msk.f32.mxu1 %vm145_vm0, %v758_v18 }
 0x803   :  { %1011 = vmatmul.mubr.msk.f32.vlgmr.msra.gmra.mrb[6].mxu1 %vm145_vm0, %v759_v21 }
 0x8d6   :  { %v1012_v23 = vpop.f32.mrb[6].mxu1 }
 0x8d7   :  { %v846_v24 = vadd.f32 %v1012_v23, %v929_v22  ;;  %v840_v25 = vpop.f32.mrb[7].mxu1 }
 0x8d8   :  { %v841_v26 = vadd.f32 %v929_v22, %v840_v25 }
 0x8d9   :  { %v850_v27 = vmax.f32 %v846_v24, 0.0 }
 0x8da   :  { %v849_v28 = vmax.f32 %v841_v26, 0.0 }
 0x8db   :  { %v852_v29 = vadd.f32 %v850_v27, %v759_v21 }
 0x8dc   :  { %v851_v30 = vadd.f32 %v849_v28, %v758_v18 }
 0x8dd   :  { %v856_v31 = vsel %vm145_vm0, %v852_v29, 0.0 }
 0x8de   :  { %857 = vadd.xlane.f32.xlu0 %v856_v31  ;;  %v853_v32 = vsel %vm145_vm0, %v851_v30, 0.0 }
 0x8df   :  { %854 = vadd.xlane.f32.xlu1 %v853_v32 }
 0x96b   :  { %v858_v33 = vpop.xlane.xlu0 %857 }
 0x96c   :  { %v860_v34 = vmul.f32 0.03125, %v858_v33  ;;  %v855_v35 = vpop.xlane.xlu1 %854 }
 0x96d   :  { %v859_v36 = vmul.f32 0.03125, %v855_v35 }
 0x96e   :  { %v862_v37 = vsub.f32 %v852_v29, %v860_v34 }
 0x96f   :  { %v861_v38 = vsub.f32 %v851_v30, %v859_v36 }
 0x970   :  { %v864_v39 = vmul.f32 %v862_v37, %v862_v37 }
 0x971   :  { %v863_v40 = vmul.f32 %v861_v38, %v861_v38 }
 0x972   :  { %v868_v41 = vsel %vm145_vm0, %v864_v39, 0.0 }
 0x973   :  { %869 = vadd.xlane.f32.xlu0 %v868_v41  ;;  %v865_v42 = vsel %vm145_vm0, %v863_v40, 0.0 }
 0x974   :  { %866 = vadd.xlane.f32.xlu1 %v865_v42 }
 0xa00   :  { %v870_v43 = vpop.xlane.xlu0 %869 }
 0xa01   :  { %v872_v44 = vmul.f32 0.03125, %v870_v43  ;;  %v867_v45 = vpop.xlane.xlu1 %866 }
 0xa02   :  { %v871_v46 = vmul.f32 0.03125, %v867_v45 }
 0xa03   :  { %v874_v47 = vadd.f32 1e-05, %v872_v44 }
 0xa04   :  { %v873_v48 = vadd.f32 1e-05, %v871_v46 }
 0xa05   :  { %1069 = vrsqrt.f32 %v874_v47 }
 0xa06   :  { %1071 = vrsqrt.f32 %v873_v48 }
 0xa0f   :  { %v1070_v49 = vpop.eup %1069 }
 0xa10   :  { %v1072_v51 = vpop.eup %1071  ;;  %v878_v52 = vmul.f32 %v1070_v49, %v862_v37 }
 0xa11   :  { %v877_v53 = vmul.f32 %v1072_v51, %v861_v38 }
 0xa12   :  { %v884_v55 = vmul.f32 %v932_v50, %v878_v52 }
 0xa13   :  { %v883_v56 = vmul.f32 %v932_v50, %v877_v53 }
 0xa14   :  { %v890_v57 = vadd.f32 %v933_v54, %v884_v55 }
 0xa15   :  { %v889_v58 = vadd.f32 %v933_v54, %v883_v56 }
 0xa16   :  { %892 = vst.msk [vmem:[#allocation13 + $0x8] sm:$0xff] %vm145_vm0, %v890_v57 }
 0xa17   :  { %891 = vst.msk [vmem:[#allocation13] sm:$0xff] %vm145_vm0, %v889_v58 }
 0xa18   :  { %1216 = shalt.err (!%p1213_p10)
}
 0xa19   :  { %s1217_s16 = scalar_lea.hbm %s1519_s10, 256 }
 0xa1a   :  { %p1218_p11 = scmp.ne.s32.totalorder %s1519_s10, %s1217_s16  ;;  %p1221_p12 = scmp.lt.u32.totalorder %s1217_s16, %s1519_s10 }
 0xa1c   :  { %p1223_p13 = pnand %p1221_p12, %p1218_p11 }
 0xa1e   :  { %1226 = shalt.err (!%p1223_p13)
}
 0xa1f   :  { %904 = dma.vmem_to_hbm [thread:$0]  %s899_s11, 256, %s1519_s10, [#allocation4], %s1239_s25, %s1239_s25, %s1240_s26  }
 0xa20   :  { %1235 = dma.done.wait [#allocation4], 256  }
 0xa21   :  { %1236 = vsyncadd [#allocation4], 4294967040 }
 0xa22   :  { %908 = vsyncpa [#allocation3], 1 }
 0xa23   :  { %909 = vsyncpa [#allocation6], 1 }
 0xa24   :  { %910 = vsyncpa [#allocation9], 1 }
 0xa25   :  { %911 = vsyncpa [#allocation12], 1 }
 0xa26   :  { %912 = vsyncpa [#allocation4], 1 }

</bundles_post_ra>
